<compile_context>
chip_gen: v7x
topology: tpu7x:2x2x1
jax: 0.10.0
libtpu: 0.0.40
codegen_flags: <defaults>
</compile_context>

<pallas_src>
import functools

import jax
import jax.numpy as jnp
from jax.experimental import pallas as pl
from jax.experimental.pallas import tpu as pltpu


def _pick_tile(dim: int, base: int, target: int) -> int:
    """Pick a tile size along one axis.

    Preference order:
      1. full extent when dim <= target (always legal),
      2. largest divisor of dim that is a multiple of `base` and <= target
         (no partial blocks),
      3. largest multiple of `base` <= target (legal; Pallas masks the
         partial last block).
    """
    if dim <= target:
        return dim
    best = 0
    for cand in range(base, target + 1, base):
        if dim % cand == 0:
            best = cand
    if best:
        return best
    return (target // base) * base


def _lora_kernel(x_ref, b_ref, a_ref, o_ref, *, scale):
    # Fold the LoRA scale into the tiny (tm, rank) operand: rank << tn, so
    # this replaces a full-tile VPU multiply with a negligible one.
    b_scaled = b_ref[...].astype(jnp.float32) * scale
    # (tm, rank) @ (rank, tn) on the MXU with f32 accumulation.
    delta = jnp.dot(b_scaled, a_ref[...], preferred_element_type=jnp.float32)
    o_ref[...] = (x_ref[...].astype(jnp.float32) + delta).astype(o_ref.dtype)


def lora_forward(x, lora_B, lora_A, *, alpha=1, enable=True,
                 tm_target=512, tn_target=2048):
    """Returns x + (lora_B @ lora_A).reshape(x.shape) * (alpha / rank)."""
    if not enable:
        return x

    features_in, features_out = x.shape
    rank = lora_B.shape[1]
    assert lora_B.shape == (features_in, rank)
    assert lora_A.shape == (rank, features_out)

    scale = float(alpha) / float(rank)

    # Shape-adaptive tiles: big enough to amortize per-step overhead,
    # lane-dense output (tn multiple of 128 whenever features_out >= 128).
    tm = _pick_tile(features_in, 8, tm_target)
    tn = _pick_tile(features_out, 128, tn_target)
    grid = (pl.cdiv(features_in, tm), pl.cdiv(features_out, tn))

    itemsize = jnp.dtype(x.dtype).itemsize
    x_tile = tm * tn * itemsize
    a_tile = rank * tn * jnp.dtype(lora_A.dtype).itemsize
    b_tile = tm * rank * jnp.dtype(lora_B.dtype).itemsize
    # x tile + out tile + A tile + B tile, each double-buffered by the pipeline.
    vmem_needed = 2 * (2 * x_tile + a_tile + b_tile)
    vmem_limit = min(max(int(vmem_needed * 1.5) + (4 << 20), 32 << 20), 64 << 20)

    kernel = functools.partial(_lora_kernel, scale=scale)

    return pl.pallas_call(
        kernel,
        out_shape=jax.ShapeDtypeStruct((features_in, features_out), x.dtype),
        grid_spec=pltpu.PrefetchScalarGridSpec(
            num_scalar_prefetch=0,
            grid=grid,
            in_specs=[
                # x tile (the parametrized weight).
                pl.BlockSpec((tm, tn), lambda i, j: (i, j)),
                # lora_B: re-DMA'd only when the row-block index changes.
                pl.BlockSpec((tm, rank), lambda i, j: (i, 0)),
                # lora_A: small (rank, tn) lane-window per column block.
                pl.BlockSpec((rank, tn), lambda i, j: (0, j)),
            ],
            out_specs=pl.BlockSpec((tm, tn), lambda i, j: (i, j)),
        ),
        compiler_params=pltpu.CompilerParams(
            dimension_semantics=("parallel", "parallel"),
            vmem_limit_bytes=vmem_limit,
        ),
    )(x, lora_B, lora_A)


if __name__ == "__main__":
    # Small, deterministic example consistent with the module's __init__.
    features_in, features_out, rank, alpha = 32, 256, 4, 1

    key = jax.random.PRNGKey(0)
    kx, ka, kb = jax.random.split(key, 3)

    # The weight being parametrized (in PyTorch this is module.weight).
    x = jax.random.normal(kx, (features_in, features_out), dtype=jnp.float32)

    # Module init: lora_A ~ Normal(0, 1), lora_B = zeros.
    lora_A = jax.random.normal(ka, (rank, features_out), dtype=jnp.float32)
    lora_B = jnp.zeros((features_in, rank), dtype=jnp.float32)

    out = jax.block_until_ready(lora_forward(x, lora_B, lora_A, alpha=alpha))
    ref0 = x + (lora_B @ lora_A).reshape(x.shape) * (alpha / rank)
    assert jnp.allclose(out, ref0, atol=1e-5, rtol=1e-5)

    # Non-zero B (as after training) with a multi-tile grid to exercise
    # nonzero block indices on both grid axes.
    fi2, fo2 = 64, 512
    kx2, ka2, kb2 = jax.random.split(kb, 3)
    x2 = jax.random.normal(kx2, (fi2, fo2), dtype=jnp.float32)
    A2 = jax.random.normal(ka2, (rank, fo2), dtype=jnp.float32)
    B2 = jax.random.normal(kb2, (fi2, rank), dtype=jnp.float32)
    out2 = jax.block_until_ready(
        lora_forward(x2, B2, A2, alpha=alpha, tm_target=16, tn_target=128))
    ref2 = x2 + (B2 @ A2).reshape(x2.shape) * (alpha / rank)
    assert jnp.allclose(out2, ref2, atol=1e-4, rtol=1e-4)

    # Non-(8,128)-aligned shape: exercises the partial-last-block (masked
    # store) path for the column axis and full-extent rows.
    fi3, fo3 = 30, 300
    kx3, ka3, kb3 = jax.random.split(kx2, 3)
    x3 = jax.random.normal(kx3, (fi3, fo3), dtype=jnp.float32)
    A3 = jax.random.normal(ka3, (rank, fo3), dtype=jnp.float32)
    B3 = jax.random.normal(kb3, (fi3, rank), dtype=jnp.float32)
    out3 = jax.block_until_ready(
        lora_forward(x3, B3, A3, alpha=alpha, tn_target=128))
    ref3 = x3 + (B3 @ A3).reshape(x3.shape) * (alpha / rank)
    assert jnp.allclose(out3, ref3, atol=1e-4, rtol=1e-4)

    print("KERNEL_OK")
</pallas_src>

<mosaic_0001>
module attributes {stable_mosaic.version = 11 : i64} {
  func.func @_lora_kernel(%arg0: i32, %arg1: i32, %arg2: memref<32x256xf32, #tpu.memory_space<vmem>>, %arg3: memref<32x4xf32, #tpu.memory_space<vmem>>, %arg4: memref<4x256xf32, #tpu.memory_space<vmem>>, %arg5: memref<32x256xf32, #tpu.memory_space<vmem>>) attributes {dimension_semantics = [#tpu.dimension_semantics<parallel>, #tpu.dimension_semantics<parallel>], iteration_bounds = array<i64: 1, 1>, scalar_prefetch = 0 : i64, scratch_operands = 0 : i64, tpu.core_type = #tpu.core_type<tc>, window_params = [{transform_indices = @transform_0, window_bounds = array<i64: 32, 256>}, {transform_indices = @transform_1, window_bounds = array<i64: 32, 4>}, {transform_indices = @transform_2, window_bounds = array<i64: 4, 256>}, {transform_indices = @transform_3, window_bounds = array<i64: 32, 256>}]} {
    %c0 = arith.constant 0 : index
    %c0_0 = arith.constant 0 : index
    %0 = vector.load %arg3[%c0, %c0_0] : memref<32x4xf32, #tpu.memory_space<vmem>>, vector<32x4xf32>
    %cst = arith.constant 2.500000e-01 : f32
    %1 = vector.broadcast %cst : f32 to vector<32x4xf32>
    %2 = arith.mulf %0, %1 : vector<32x4xf32>
    %c0_1 = arith.constant 0 : index
    %c0_2 = arith.constant 0 : index
    %3 = vector.load %arg4[%c0_1, %c0_2] : memref<4x256xf32, #tpu.memory_space<vmem>>, vector<4x256xf32>
    %cst_3 = arith.constant dense<0.000000e+00> : vector<32x256xf32>
    %4 = tpu.matmul %2, %3, %cst_3 {dimension_numbers = #tpu.dot_dimension_numbers<[1], [0], [0], [1], [0, 0, 1, 1], [], []>} : vector<32x4xf32>, vector<4x256xf32>, vector<32x256xf32> -> vector<32x256xf32>
    %c0_4 = arith.constant 0 : index
    %c0_5 = arith.constant 0 : index
    %5 = vector.load %arg2[%c0_4, %c0_5] : memref<32x256xf32, #tpu.memory_space<vmem>>, vector<32x256xf32>
    %6 = arith.addf %5, %4 : vector<32x256xf32>
    %c0_6 = arith.constant 0 : index
    %c0_7 = arith.constant 0 : index
    %7 = vector.load %arg5[%c0_6, %c0_7] : memref<32x256xf32, #tpu.memory_space<vmem>>, vector<32x256xf32>
    tpu.vector_store %arg5[%c0_6, %c0_7], %6 {strides = array<i32>} : memref<32x256xf32, #tpu.memory_space<vmem>>, vector<32x256xf32>,
    return
  }
  func.func @transform_0(%arg0: i32, %arg1: i32) -> (i32, i32) {
    %c0_i32 = arith.constant 0 : i32
    return %arg0, %arg1 : i32, i32
  }
  func.func @transform_1(%arg0: i32, %arg1: i32) -> (i32, i32) {
    %c0_i32 = arith.constant 0 : i32
    %c0_i32_0 = arith.constant 0 : i32
    return %arg0, %c0_i32 : i32, i32
  }
  func.func @transform_2(%arg0: i32, %arg1: i32) -> (i32, i32) {
    %c0_i32 = arith.constant 0 : i32
    %c0_i32_0 = arith.constant 0 : i32
    return %c0_i32, %arg1 : i32, i32
  }
  func.func @transform_3(%arg0: i32, %arg1: i32) -> (i32, i32) {
    %c0_i32 = arith.constant 0 : i32
    return %arg0, %arg1 : i32, i32
  }
}

</mosaic_0001>

<bundles_post_ra>
// kernel: tpu_custom_call.1
= control target key start
LH: loop header
LB: loop body
LE: loop exit
PB: predicated region body
PF: predicated region fallthrough
CT: control target
= control target key end

     0   :  { %8 = vsyncpa [#allocation3], 0  ;;  %s320_s0 = inlined_call_operand.hbm [shape: f32[32,256], index: 0, kind: input, shape index: {}]   ;;  %s321_s1 = inlined_call_operand.vmem [shape: f32[32,4], index: 1, kind: input, shape index: {}]   ;;  %s322_s2 = inlined_call_operand.vmem [shape: f32[4,256], index: 2, kind: input, shape index: {}]   ;;  %s323_s3 = inlined_call_operand.hbm [shape: f32[32,256], index: 3, kind: output, shape index: {}]  }
   0x1   :  { %9 = vsyncpa [#allocation4], 0  ;;  %s250_s12 = smov [#allocation2]   ;;  %s202_s16 = scalar_lea.hbm %s320_s0, 1024 }
   0x2   :  { %s15_s13 = sshll.u32 %s250_s12, 4  ;;  %p203_p0 = scmp.ne.s32.totalorder %s320_s0, %s202_s16  ;;  %s16_s13 = int_to_ptr.vmem [resolvable:$true] %s15_s13 }
   0x3   :  { %p206_p1 = scmp.lt.u32.totalorder %s202_s16, %s320_s0 }
   0x5   :  { %p208_p2 = pnand %p206_p1, %p203_p0 }
   0x7   :  { %211 = shalt.err (!%p208_p2)
}
   0x8   :  { %s212_s21 = scalar_lea.vmem %s16_s13, 1024  ;;  %p217_p4 = scmp.lt.s32.totalorder %s16_s13, %s16_s13 }
   0x9   :  { %p213_p3 = scmp.ne.s32.totalorder %s16_s13, %s212_s21  ;;  %p218_p5 = scmp.lt.s32.totalorder %s212_s21, %s212_s21 }
   0xb   :  { %p219_p6 = por %p218_p5, %p217_p4 }
   0xd   :  { %p220_p7 = pnand %p219_p6, %p213_p3 }
   0xf   :  { %223 = shalt.err (!%p220_p7)
}
  0x10   :  { %s251_s22 = smov 256   ;;  %s252_s23 = smov 16  }
  0x11   :  { %21 = dma.hbm_to_vmem [thread:$0]  %s320_s0, 1024, %s16_s13, [#allocation3], %s251_s22, %s251_s22, %s252_s23  }
  0x12   :  { %246 = dma.done.wait [#allocation3], 1024  }
  0x13   :  { %247 = vsyncadd [#allocation3], 4294966272  ;;  %v253_v0 = vmov 0.0   ;;  %v37_v1 = vld [vmem:[%s322_s2] sm:$0xff]  ;;  %vm53_vm0 = vcmask 1043456   ;;  %v31_v3 = vld [vmem:[%s321_s1 + $0x10] sm:$0xff] }
  0x14   :  { %122 = vmatprep.mubr.f32.mxu0 %v253_v0  ;;  %134 = vmatprep.mubr.f32.mxu1 %v253_v0  ;;  %v29_v2 = vld [vmem:[%s321_s1] sm:$0xff]  ;;  %v39_v4 = vcombine.high %v37_v1, %v37_v1  ;;  %v35_v6 = vmul.f32 0.25, %v31_v3  ;;  %vm40_vm1 = vcmask 31744   ;;  %v30_v7 = vld [vmem:[%s321_s1 + $0x8] sm:$0xff]  ;;  %v32_v8 = vld [vmem:[%s321_s1 + $0x18] sm:$0xff]  ;;  %s254_s1 = smov [#allocation5]  }
  0x15   :  { %v33_v5 = vmul.f32 0.25, %v29_v2  ;;  %v34_v9 = vmul.f32 0.25, %v30_v7  ;;  %v36_v10 = vmul.f32 0.25, %v32_v8  ;;  %v147_v11 = vld [vmem:[#allocation2] sm:$0xff]  ;;  %v148_v13 = vld [vmem:[#allocation2 + $0x8] sm:$0xff]  ;;  %v149_v23 = vld [vmem:[#allocation2 + $0x10] sm:$0xff] }
  0x16   :  { %188 = vmatprep.subr.msk.mxu0 %vm53_vm0, %v39_v4  ;;  %194 = vmatprep.subr.msk.mxu1 %vm53_vm0, %v39_v4  ;;  %v151_v12 = vld [vmem:[#allocation2 + $0x20] sm:$0xff]  ;;  %v152_v14 = vld [vmem:[#allocation2 + $0x28] sm:$0xff]  ;;  %v153_v24 = vld [vmem:[#allocation2 + $0x30] sm:$0xff]  ;;  %s176_s2 = sshll.u32 %s254_s1, 4  ;;  %s177_s2 = int_to_ptr.vmem [resolvable:$true] %s176_s2 }
  0x17   :  { %189 = vmatpush1.msk.msra.mxu0 %vm53_vm0, %v37_v1  ;;  %195 = vmatpush1.msk.msra.mxu1 %vm53_vm0, %v37_v1  ;;  %v150_v25 = vld [vmem:[#allocation2 + $0x18] sm:$0xff]  ;;  %s224_s8 = scalar_lea.vmem %s177_s2, 1024  ;;  %p229_p9 = scmp.lt.s32.totalorder %s177_s2, %s177_s2 }
  0x18   :  { %190 = vmatmul.mubr.msk.f32.vlgmr.msra.gmra.mrb[0].mxu0 %vm40_vm1, %v33_v5  ;;  %192 = vmatmul.mubr.msk.f32.vlgmr.msra.gmra.mrb[0].mxu1 %vm40_vm1, %v35_v6  ;;  %v154_v26 = vld [vmem:[#allocation2 + $0x38] sm:$0xff]  ;;  %p225_p8 = scmp.ne.s32.totalorder %s177_s2, %s224_s8  ;;  %p230_p10 = scmp.lt.s32.totalorder %s224_s8, %s224_s8 }
  0x19   :  { %128 = vmatprep.mubr.f32.mxu0 %v253_v0  ;;  %140 = vmatprep.mubr.f32.mxu1 %v253_v0 }
  0x1a   :  { %p231_p11 = por %p230_p10, %p229_p9 }
  0x1c   :  { %191 = vmatmul.mubr.msk.f32.gmra.mrb[2].mxu0 %vm40_vm1, %v34_v9  ;;  %193 = vmatmul.mubr.msk.f32.gmra.mrb[2].mxu1 %vm40_vm1, %v36_v10  ;;  %p232_p12 = pnand %p231_p11, %p225_p8 }
  0xeb   :  { %v124_v15 = vpop.f32.mrb[0].mxu0  ;;  %v136_v16 = vpop.f32.mrb[0].mxu1 }
  0xec   :  { %v155_v17 = vadd.f32 %v147_v11, %v124_v15  ;;  %v159_v18 = vadd.f32 %v151_v12, %v136_v16  ;;  %v126_v19 = vpop.f32.mrb[1].mxu0  ;;  %v138_v20 = vpop.f32.mrb[1].mxu1 }
  0xed   :  { %v156_v21 = vadd.f32 %v148_v13, %v126_v19  ;;  %v160_v22 = vadd.f32 %v152_v14, %v138_v20 }
  0xee   :  { %163 = vst [vmem:[#allocation5] sm:$0xff] %v155_v17  ;;  %167 = vst [vmem:[#allocation5 + $0x20] sm:$0xff] %v159_v18 }
  0xef   :  { %164 = vst [vmem:[#allocation5 + $0x8] sm:$0xff] %v156_v21  ;;  %168 = vst [vmem:[#allocation5 + $0x28] sm:$0xff] %v160_v22  ;;  %v130_v27 = vpop.f32.mrb[2].mxu0  ;;  %v142_v28 = vpop.f32.mrb[2].mxu1 }
  0xf0   :  { %v157_v29 = vadd.f32 %v149_v23, %v130_v27  ;;  %v161_v30 = vadd.f32 %v153_v24, %v142_v28  ;;  %v132_v31 = vpop.f32.mrb[3].mxu0  ;;  %v144_v32 = vpop.f32.mrb[3].mxu1 }
  0xf1   :  { %v158_v33 = vadd.f32 %v150_v25, %v132_v31  ;;  %v162_v34 = vadd.f32 %v154_v26, %v144_v32 }
  0xf2   :  { %165 = vst [vmem:[#allocation5 + $0x10] sm:$0xff] %v157_v29  ;;  %169 = vst [vmem:[#allocation5 + $0x30] sm:$0xff] %v161_v30 }
  0xf3   :  { %166 = vst [vmem:[#allocation5 + $0x18] sm:$0xff] %v158_v33  ;;  %170 = vst [vmem:[#allocation5 + $0x38] sm:$0xff] %v162_v34 }
  0xf4   :  { %235 = shalt.err (!%p232_p12)
}
  0xf5   :  { %s236_s11 = scalar_lea.hbm %s323_s3, 1024 }
  0xf6   :  { %p237_p13 = scmp.ne.s32.totalorder %s323_s3, %s236_s11  ;;  %p240_p0 = scmp.lt.u32.totalorder %s236_s11, %s323_s3 }
  0xf8   :  { %p242_p1 = pnand %p240_p0, %p237_p13 }
  0xfa   :  { %245 = shalt.err (!%p242_p1)
}
  0xfb   :  { %182 = dma.vmem_to_hbm [thread:$0]  %s177_s2, 1024, %s323_s3, [#allocation4], %s251_s22, %s251_s22, %s252_s23  }
  0xfc   :  { %248 = dma.done.wait [#allocation4], 1024  }
  0xfd   :  { %249 = vsyncadd [#allocation4], 4294966272 }
  0xfe   :  { %186 = vsyncpa [#allocation3], 1 }
  0xff   :  { %187 = vsyncpa [#allocation4], 1 }

</bundles_post_ra>
